<compile_context>
chip_gen: v5e
topology: v5e:2x2
jax: 0.10.0
libtpu: 0.0.40
codegen_flags: <defaults>
</compile_context>

<pallas_src>
import functools

import jax
import jax.numpy as jnp
import numpy as np
from jax import lax
from jax.experimental import pallas as pl
from jax.experimental.pallas import tpu as pltpu

# ---------------- model dims (from the PyTorch module) ----------------
SEQ_INPUT_DIM = 5          # len(dynamic_features_j1)
GRU_HIDDEN_DIM = 32

_UNROLL_MAX_T = 16         # fully unroll the recurrence up to this many steps


# ======================= fused GRU temporal-encoder kernel =======================
def gru_kernel(x_ref, w_ih_ref, w_hh_ref, b_ref, h_out_ref, *scratch,
               n_batch, seq_len, unrolled):
    """Single-layer GRU over time with lane-packed (3H-wide) gates.

    x_ref    : (T*N, D)  bf16, time-major flattened sequence
    w_ih_ref : (D, 3H)   bf16, columns [r | z | n]
    w_hh_ref : (H, 3H)   bf16, columns [r | z | n]
    b_ref    : (2, 3H)   f32 : row 0 = [b_ir+b_hr | b_iz+b_hz | b_in]
                               row 1 = [    0     |     0     | b_hn]
    h_out_ref: (N, H)    f32, final hidden state h_n[-1]
    scratch  : optionally one VMEM (T*N, 3H) f32 buffer (fori_loop path only)
    """
    H = GRU_HIDDEN_DIM

    w_ih = w_ih_ref[...]                                   # (D, 3H) bf16
    w_hh = w_hh_ref[...]                                   # (H, 3H) bf16
    b_gi = b_ref[0:1, :]                                   # (1, 3H) f32
    # Hoisted out of the time loop: broadcast once, reuse every step.
    b_gh = jnp.broadcast_to(b_ref[1:2, :], (n_batch, 3 * H))   # (N, 3H) f32

    # Hoisted, fused input projection: ONE bf16 matmul over all timesteps.
    x = x_ref[...]                                         # (T*N, D) bf16
    gi = jnp.dot(x, w_ih, preferred_element_type=jnp.float32) + b_gi   # (T*N, 3H)

    h0 = jnp.zeros((n_batch, H), jnp.float32)

    def step(g_t, h):
        # Single fused hidden projection: one MXU round trip per step.
        gh = jnp.dot(h.astype(jnp.bfloat16), w_hh,
                     preferred_element_type=jnp.float32) + b_gh        # (N, 3H)
        # r and z share one sigmoid over lanes [0, 2H); n uses lanes [2H, 3H).
        rz = jax.nn.sigmoid(g_t[:, :2 * H] + gh[:, :2 * H])
        r = rz[:, :H]
        z = rz[:, H:2 * H]
        n = jnp.tanh(g_t[:, 2 * H:] + r * gh[:, 2 * H:])
        return (1.0 - z) * n + z * h

    if unrolled:
        # Small T: fully unrolled, static sublane-aligned slices of gi.
        h = h0
        for t in range(seq_len):
            lo = t * n_batch
            h = step(gi[lo:lo + n_batch, :], h)
    else:
        # Large T: bound vreg live ranges -- park gi in VMEM scratch and
        # stream per-step blocks through a fori_loop.
        gi_ref = scratch[0]
        gi_ref[...] = gi

        def body(t, h):
            lo = pl.multiple_of(t * n_batch, 8)
            return step(gi_ref[pl.ds(lo, n_batch), :], h)

        h = lax.fori_loop(0, seq_len, body, h0)

    h_out_ref[...] = h


def pack_gru_params(p):
    """Pre-pack PyTorch-layout GRU params: fused lane-packed weights (bf16),
    folded biases (f32). Gate column order [r | z | n] matches nn.GRU rows."""
    H = GRU_HIDDEN_DIM
    w_ih, w_hh, b_ih, b_hh = p["w_ih"], p["w_hh"], p["b_ih"], p["b_hh"]
    w_ih_f = w_ih.T.astype(jnp.bfloat16)                   # (D, 3H)
    w_hh_f = w_hh.T.astype(jnp.bfloat16)                   # (H, 3H)
    b_gi = jnp.concatenate([
        b_ih[0:H] + b_hh[0:H],             # r: both biases fold
        b_ih[H:2 * H] + b_hh[H:2 * H],     # z: both biases fold
        b_ih[2 * H:3 * H],                 # n: input bias only
    ])
    b_gh = jnp.concatenate([
        jnp.zeros((2 * H,), jnp.float32),  # r, z: nothing left
        b_hh[2 * H:3 * H],                 # n: hidden bias (stays inside r*(.))
    ])
    b = jnp.stack([b_gi, b_gh]).astype(jnp.float32)        # (2, 3H)
    return {"w_ih_f": w_ih_f, "w_hh_f": w_hh_f, "b": b}


@jax.jit
def player_temporal_encoder(x, packed):
    """x: (N, T, D) batch_first  ->  h_n[-1]: (N, H)."""
    N, T, D = x.shape
    H = GRU_HIDDEN_DIM

    # Pad batch to a multiple of 8 so every per-step row block is sublane-aligned.
    n_pad = (N + 7) // 8 * 8
    if n_pad != N:
        x = jnp.pad(x, ((0, n_pad - N), (0, 0), (0, 0)))

    # batch_first -> time-major flatten + bf16 cast; tiny XLA ops fused into
    # this jit so the kernel sees a 2-D, tile-aligned bf16 operand.
    x_tm = jnp.transpose(x, (1, 0, 2)).reshape(T * n_pad, D).astype(jnp.bfloat16)

    unrolled = T <= _UNROLL_MAX_T
    kernel = functools.partial(gru_kernel, n_batch=n_pad, seq_len=T,
                               unrolled=unrolled)
    scratch = [] if unrolled else [pltpu.VMEM((T * n_pad, 3 * H), jnp.float32)]

    vmem = pl.BlockSpec(memory_space=pltpu.MemorySpace.VMEM)   # whole array in VMEM
    h = pl.pallas_call(
        kernel,
        out_shape=jax.ShapeDtypeStruct((n_pad, H), jnp.float32),
        in_specs=[vmem, vmem, vmem, vmem],
        out_specs=vmem,
        scratch_shapes=scratch,
    )(x_tm, packed["w_ih_f"], packed["w_hh_f"], packed["b"])
    return h[:N]


# ============================ pure-JAX reference ==============================
def reference(x, p):
    N, T, _ = x.shape
    H = GRU_HIDDEN_DIM
    h = jnp.zeros((N, H), jnp.float32)
    for t in range(T):
        x_t = x[:, t, :]
        gi = x_t @ p["w_ih"].T + p["b_ih"]
        gh = h @ p["w_hh"].T + p["b_hh"]
        i_r, i_z, i_n = gi[:, :H], gi[:, H:2 * H], gi[:, 2 * H:]
        h_r, h_z, h_n = gh[:, :H], gh[:, H:2 * H], gh[:, 2 * H:]
        r = jax.nn.sigmoid(i_r + h_r)
        z = jax.nn.sigmoid(i_z + h_z)
        n = jnp.tanh(i_n + r * h_n)
        h = (1.0 - z) * n + z * h
    return h


# ================================ parameters ==================================
def init_params(key):
    """Matches PyTorch nn.GRU default init: U(-1/sqrt(H), 1/sqrt(H))."""
    H, D = GRU_HIDDEN_DIM, SEQ_INPUT_DIM
    kb = 1.0 / np.sqrt(H)
    ks = jax.random.split(key, 4)
    return {
        "w_ih": jax.random.uniform(ks[0], (3 * H, D), jnp.float32, -kb, kb),
        "w_hh": jax.random.uniform(ks[1], (3 * H, H), jnp.float32, -kb, kb),
        "b_ih": jax.random.uniform(ks[2], (3 * H,), jnp.float32, -kb, kb),
        "b_hh": jax.random.uniform(ks[3], (3 * H,), jnp.float32, -kb, kb),
    }


# ==================================== main ====================================
if __name__ == "__main__":
    key = jax.random.PRNGKey(0)
    N, T = 8, 8                      # players (batch), sequence length

    k_seq, k_par = jax.random.split(key)
    player_seq = jax.random.normal(k_seq, (N, T, SEQ_INPUT_DIM), jnp.float32)
    params = init_params(k_par)
    packed = pack_gru_params(params)

    out = jax.block_until_ready(player_temporal_encoder(player_seq, packed))

    # bf16 matmul operands (f32 accumulation) => relaxed tolerance vs f32 reference.
    ref = reference(player_seq, params)
    np.testing.assert_allclose(np.asarray(out), np.asarray(ref), rtol=5e-2, atol=5e-2)

    print("KERNEL_OK")
</pallas_src>

<mosaic_0001>
module attributes {stable_mosaic.version = 11 : i64} {
  func.func @gru_kernel(%arg0: memref<64x5xbf16, #tpu.memory_space<vmem>>, %arg1: memref<5x96xbf16, #tpu.memory_space<vmem>>, %arg2: memref<32x96xbf16, #tpu.memory_space<vmem>>, %arg3: memref<2x96xf32, #tpu.memory_space<vmem>>, %arg4: memref<8x32xf32, #tpu.memory_space<vmem>>) attributes {dimension_semantics = [], scalar_prefetch = 0 : i64, scratch_operands = 0 : i64, tpu.core_type = #tpu.core_type<tc>} {
    %c0 = arith.constant 0 : index
    %c0_0 = arith.constant 0 : index
    %0 = vector.load %arg1[%c0, %c0_0] : memref<5x96xbf16, #tpu.memory_space<vmem>>, vector<5x96xbf16>
    %c0_1 = arith.constant 0 : index
    %c0_2 = arith.constant 0 : index
    %1 = vector.load %arg2[%c0_1, %c0_2] : memref<32x96xbf16, #tpu.memory_space<vmem>>, vector<32x96xbf16>
    %c0_3 = arith.constant 0 : index
    %c0_4 = arith.constant 0 : index
    %2 = vector.load %arg3[%c0_3, %c0_4] : memref<2x96xf32, #tpu.memory_space<vmem>>, vector<1x96xf32>
    %c1 = arith.constant 1 : index
    %c0_5 = arith.constant 0 : index
    %3 = vector.load %arg3[%c1, %c0_5] : memref<2x96xf32, #tpu.memory_space<vmem>>, vector<1x96xf32>
    %4 = vector.shape_cast %3 : vector<1x96xf32> to vector<1x96xf32>
    %5 = vector.broadcast %4 : vector<1x96xf32> to vector<8x96xf32>
    %c0_6 = arith.constant 0 : index
    %c0_7 = arith.constant 0 : index
    %6 = vector.load %arg0[%c0_6, %c0_7] : memref<64x5xbf16, #tpu.memory_space<vmem>>, vector<64x5xbf16>
    %cst = arith.constant dense<0.000000e+00> : vector<64x96xf32>
    %7 = tpu.matmul %6, %0, %cst {dimension_numbers = #tpu.dot_dimension_numbers<[1], [0], [0], [1], [0, 0, 1, 1], [], []>} : vector<64x5xbf16>, vector<5x96xbf16>, vector<64x96xf32> -> vector<64x96xf32>
    %8 = vector.broadcast %2 : vector<1x96xf32> to vector<64x96xf32>
    %9 = arith.addf %7, %8 : vector<64x96xf32>
    %cst_8 = arith.constant 0.000000e+00 : f32
    %10 = vector.broadcast %cst_8 : f32 to vector<8x32xf32>
    %11 = vector.extract_strided_slice %9 {offsets = [0, 0], sizes = [8, 96], strides = [1, 1]} : vector<64x96xf32> to vector<8x96xf32>
    %12 = arith.truncf %10 : vector<8x32xf32> to vector<8x32xbf16>
    %cst_9 = arith.constant dense<0.000000e+00> : vector<8x96xf32>
    %13 = tpu.matmul %12, %1, %cst_9 {dimension_numbers = #tpu.dot_dimension_numbers<[1], [0], [0], [1], [0, 0, 1, 1], [], []>} : vector<8x32xbf16>, vector<32x96xbf16>, vector<8x96xf32> -> vector<8x96xf32>
    %14 = arith.addf %13, %5 : vector<8x96xf32>
    %15 = vector.extract_strided_slice %11 {offsets = [0, 0], sizes = [8, 64], strides = [1, 1]} : vector<8x96xf32> to vector<8x64xf32>
    %16 = vector.extract_strided_slice %14 {offsets = [0, 0], sizes = [8, 64], strides = [1, 1]} : vector<8x96xf32> to vector<8x64xf32>
    %17 = arith.addf %15, %16 : vector<8x64xf32>
    %18 = arith.negf %17 : vector<8x64xf32>
    %19 = math.exp %18 : vector<8x64xf32>
    %cst_10 = arith.constant 1.000000e+00 : f32
    %20 = vector.broadcast %cst_10 : f32 to vector<8x64xf32>
    %21 = arith.addf %20, %19 : vector<8x64xf32>
    %22 = arith.divf %20, %21 : vector<8x64xf32>
    %23 = vector.extract_strided_slice %22 {offsets = [0, 0], sizes = [8, 32], strides = [1, 1]} : vector<8x64xf32> to vector<8x32xf32>
    %24 = vector.extract_strided_slice %22 {offsets = [0, 32], sizes = [8, 32], strides = [1, 1]} : vector<8x64xf32> to vector<8x32xf32>
    %25 = vector.extract_strided_slice %11 {offsets = [0, 64], sizes = [8, 32], strides = [1, 1]} : vector<8x96xf32> to vector<8x32xf32>
    %26 = vector.extract_strided_slice %14 {offsets = [0, 64], sizes = [8, 32], strides = [1, 1]} : vector<8x96xf32> to vector<8x32xf32>
    %27 = arith.mulf %23, %26 : vector<8x32xf32>
    %28 = arith.addf %25, %27 : vector<8x32xf32>
    %29 = math.tanh %28 : vector<8x32xf32>
    %cst_11 = arith.constant 1.000000e+00 : f32
    %30 = vector.broadcast %cst_11 : f32 to vector<8x32xf32>
    %31 = arith.subf %30, %24 : vector<8x32xf32>
    %32 = arith.mulf %31, %29 : vector<8x32xf32>
    %33 = arith.mulf %24, %10 : vector<8x32xf32>
    %34 = arith.addf %32, %33 : vector<8x32xf32>
    %35 = vector.extract_strided_slice %9 {offsets = [8, 0], sizes = [8, 96], strides = [1, 1]} : vector<64x96xf32> to vector<8x96xf32>
    %36 = arith.truncf %34 : vector<8x32xf32> to vector<8x32xbf16>
    %cst_12 = arith.constant dense<0.000000e+00> : vector<8x96xf32>
    %37 = tpu.matmul %36, %1, %cst_12 {dimension_numbers = #tpu.dot_dimension_numbers<[1], [0], [0], [1], [0, 0, 1, 1], [], []>} : vector<8x32xbf16>, vector<32x96xbf16>, vector<8x96xf32> -> vector<8x96xf32>
    %38 = arith.addf %37, %5 : vector<8x96xf32>
    %39 = vector.extract_strided_slice %35 {offsets = [0, 0], sizes = [8, 64], strides = [1, 1]} : vector<8x96xf32> to vector<8x64xf32>
    %40 = vector.extract_strided_slice %38 {offsets = [0, 0], sizes = [8, 64], strides = [1, 1]} : vector<8x96xf32> to vector<8x64xf32>
    %41 = arith.addf %39, %40 : vector<8x64xf32>
    %42 = arith.negf %41 : vector<8x64xf32>
    %43 = math.exp %42 : vector<8x64xf32>
    %cst_13 = arith.constant 1.000000e+00 : f32
    %44 = vector.broadcast %cst_13 : f32 to vector<8x64xf32>
    %45 = arith.addf %44, %43 : vector<8x64xf32>
    %46 = arith.divf %44, %45 : vector<8x64xf32>
    %47 = vector.extract_strided_slice %46 {offsets = [0, 0], sizes = [8, 32], strides = [1, 1]} : vector<8x64xf32> to vector<8x32xf32>
    %48 = vector.extract_strided_slice %46 {offsets = [0, 32], sizes = [8, 32], strides = [1, 1]} : vector<8x64xf32> to vector<8x32xf32>
    %49 = vector.extract_strided_slice %35 {offsets = [0, 64], sizes = [8, 32], strides = [1, 1]} : vector<8x96xf32> to vector<8x32xf32>
    %50 = vector.extract_strided_slice %38 {offsets = [0, 64], sizes = [8, 32], strides = [1, 1]} : vector<8x96xf32> to vector<8x32xf32>
    %51 = arith.mulf %47, %50 : vector<8x32xf32>
    %52 = arith.addf %49, %51 : vector<8x32xf32>
    %53 = math.tanh %52 : vector<8x32xf32>
    %cst_14 = arith.constant 1.000000e+00 : f32
    %54 = vector.broadcast %cst_14 : f32 to vector<8x32xf32>
    %55 = arith.subf %54, %48 : vector<8x32xf32>
    %56 = arith.mulf %55, %53 : vector<8x32xf32>
    %57 = arith.mulf %48, %34 : vector<8x32xf32>
    %58 = arith.addf %56, %57 : vector<8x32xf32>
    %59 = vector.extract_strided_slice %9 {offsets = [16, 0], sizes = [8, 96], strides = [1, 1]} : vector<64x96xf32> to vector<8x96xf32>
    %60 = arith.truncf %58 : vector<8x32xf32> to vector<8x32xbf16>
    %cst_15 = arith.constant dense<0.000000e+00> : vector<8x96xf32>
    %61 = tpu.matmul %60, %1, %cst_15 {dimension_numbers = #tpu.dot_dimension_numbers<[1], [0], [0], [1], [0, 0, 1, 1], [], []>} : vector<8x32xbf16>, vector<32x96xbf16>, vector<8x96xf32> -> vector<8x96xf32>
    %62 = arith.addf %61, %5 : vector<8x96xf32>
    %63 = vector.extract_strided_slice %59 {offsets = [0, 0], sizes = [8, 64], strides = [1, 1]} : vector<8x96xf32> to vector<8x64xf32>
    %64 = vector.extract_strided_slice %62 {offsets = [0, 0], sizes = [8, 64], strides = [1, 1]} : vector<8x96xf32> to vector<8x64xf32>
    %65 = arith.addf %63, %64 : vector<8x64xf32>
    %66 = arith.negf %65 : vector<8x64xf32>
    %67 = math.exp %66 : vector<8x64xf32>
    %cst_16 = arith.constant 1.000000e+00 : f32
    %68 = vector.broadcast %cst_16 : f32 to vector<8x64xf32>
    %69 = arith.addf %68, %67 : vector<8x64xf32>
    %70 = arith.divf %68, %69 : vector<8x64xf32>
    %71 = vector.extract_strided_slice %70 {offsets = [0, 0], sizes = [8, 32], strides = [1, 1]} : vector<8x64xf32> to vector<8x32xf32>
    %72 = vector.extract_strided_slice %70 {offsets = [0, 32], sizes = [8, 32], strides = [1, 1]} : vector<8x64xf32> to vector<8x32xf32>
    %73 = vector.extract_strided_slice %59 {offsets = [0, 64], sizes = [8, 32], strides = [1, 1]} : vector<8x96xf32> to vector<8x32xf32>
    %74 = vector.extract_strided_slice %62 {offsets = [0, 64], sizes = [8, 32], strides = [1, 1]} : vector<8x96xf32> to vector<8x32xf32>
    %75 = arith.mulf %71, %74 : vector<8x32xf32>
    %76 = arith.addf %73, %75 : vector<8x32xf32>
    %77 = math.tanh %76 : vector<8x32xf32>
    %cst_17 = arith.constant 1.000000e+00 : f32
    %78 = vector.broadcast %cst_17 : f32 to vector<8x32xf32>
    %79 = arith.subf %78, %72 : vector<8x32xf32>
    %80 = arith.mulf %79, %77 : vector<8x32xf32>
    %81 = arith.mulf %72, %58 : vector<8x32xf32>
    %82 = arith.addf %80, %81 : vector<8x32xf32>
    %83 = vector.extract_strided_slice %9 {offsets = [24, 0], sizes = [8, 96], strides = [1, 1]} : vector<64x96xf32> to vector<8x96xf32>
    %84 = arith.truncf %82 : vector<8x32xf32> to vector<8x32xbf16>
    %cst_18 = arith.constant dense<0.000000e+00> : vector<8x96xf32>
    %85 = tpu.matmul %84, %1, %cst_18 {dimension_numbers = #tpu.dot_dimension_numbers<[1], [0], [0], [1], [0, 0, 1, 1], [], []>} : vector<8x32xbf16>, vector<32x96xbf16>, vector<8x96xf32> -> vector<8x96xf32>
    %86 = arith.addf %85, %5 : vector<8x96xf32>
    %87 = vector.extract_strided_slice %83 {offsets = [0, 0], sizes = [8, 64], strides = [1, 1]} : vector<8x96xf32> to vector<8x64xf32>
    %88 = vector.extract_strided_slice %86 {offsets = [0, 0], sizes = [8, 64], strides = [1, 1]} : vector<8x96xf32> to vector<8x64xf32>
    %89 = arith.addf %87, %88 : vector<8x64xf32>
    %90 = arith.negf %89 : vector<8x64xf32>
    %91 = math.exp %90 : vector<8x64xf32>
    %cst_19 = arith.constant 1.000000e+00 : f32
    %92 = vector.broadcast %cst_19 : f32 to vector<8x64xf32>
    %93 = arith.addf %92, %91 : vector<8x64xf32>
    %94 = arith.divf %92, %93 : vector<8x64xf32>
    %95 = vector.extract_strided_slice %94 {offsets = [0, 0], sizes = [8, 32], strides = [1, 1]} : vector<8x64xf32> to vector<8x32xf32>
    %96 = vector.extract_strided_slice %94 {offsets = [0, 32], sizes = [8, 32], strides = [1, 1]} : vector<8x64xf32> to vector<8x32xf32>
    %97 = vector.extract_strided_slice %83 {offsets = [0, 64], sizes = [8, 32], strides = [1, 1]} : vector<8x96xf32> to vector<8x32xf32>
    %98 = vector.extract_strided_slice %86 {offsets = [0, 64], sizes = [8, 32], strides = [1, 1]} : vector<8x96xf32> to vector<8x32xf32>
    %99 = arith.mulf %95, %98 : vector<8x32xf32>
    %100 = arith.addf %97, %99 : vector<8x32xf32>
    %101 = math.tanh %100 : vector<8x32xf32>
    %cst_20 = arith.constant 1.000000e+00 : f32
    %102 = vector.broadcast %cst_20 : f32 to vector<8x32xf32>
    %103 = arith.subf %102, %96 : vector<8x32xf32>
    %104 = arith.mulf %103, %101 : vector<8x32xf32>
    %105 = arith.mulf %96, %82 : vector<8x32xf32>
    %106 = arith.addf %104, %105 : vector<8x32xf32>
    %107 = vector.extract_strided_slice %9 {offsets = [32, 0], sizes = [8, 96], strides = [1, 1]} : vector<64x96xf32> to vector<8x96xf32>
    %108 = arith.truncf %106 : vector<8x32xf32> to vector<8x32xbf16>
    %cst_21 = arith.constant dense<0.000000e+00> : vector<8x96xf32>
    %109 = tpu.matmul %108, %1, %cst_21 {dimension_numbers = #tpu.dot_dimension_numbers<[1], [0], [0], [1], [0, 0, 1, 1], [], []>} : vector<8x32xbf16>, vector<32x96xbf16>, vector<8x96xf32> -> vector<8x96xf32>
    %110 = arith.addf %109, %5 : vector<8x96xf32>
    %111 = vector.extract_strided_slice %107 {offsets = [0, 0], sizes = [8, 64], strides = [1, 1]} : vector<8x96xf32> to vector<8x64xf32>
    %112 = vector.extract_strided_slice %110 {offsets = [0, 0], sizes = [8, 64], strides = [1, 1]} : vector<8x96xf32> to vector<8x64xf32>
    %113 = arith.addf %111, %112 : vector<8x64xf32>
    %114 = arith.negf %113 : vector<8x64xf32>
    %115 = math.exp %114 : vector<8x64xf32>
    %cst_22 = arith.constant 1.000000e+00 : f32
    %116 = vector.broadcast %cst_22 : f32 to vector<8x64xf32>
    %117 = arith.addf %116, %115 : vector<8x64xf32>
    %118 = arith.divf %116, %117 : vector<8x64xf32>
    %119 = vector.extract_strided_slice %118 {offsets = [0, 0], sizes = [8, 32], strides = [1, 1]} : vector<8x64xf32> to vector<8x32xf32>
    %120 = vector.extract_strided_slice %118 {offsets = [0, 32], sizes = [8, 32], strides = [1, 1]} : vector<8x64xf32> to vector<8x32xf32>
    %121 = vector.extract_strided_slice %107 {offsets = [0, 64], sizes = [8, 32], strides = [1, 1]} : vector<8x96xf32> to vector<8x32xf32>
    %122 = vector.extract_strided_slice %110 {offsets = [0, 64], sizes = [8, 32], strides = [1, 1]} : vector<8x96xf32> to vector<8x32xf32>
    %123 = arith.mulf %119, %122 : vector<8x32xf32>
    %124 = arith.addf %121, %123 : vector<8x32xf32>
    %125 = math.tanh %124 : vector<8x32xf32>
    %cst_23 = arith.constant 1.000000e+00 : f32
    %126 = vector.broadcast %cst_23 : f32 to vector<8x32xf32>
    %127 = arith.subf %126, %120 : vector<8x32xf32>
    %128 = arith.mulf %127, %125 : vector<8x32xf32>
    %129 = arith.mulf %120, %106 : vector<8x32xf32>
    %130 = arith.addf %128, %129 : vector<8x32xf32>
    %131 = vector.extract_strided_slice %9 {offsets = [40, 0], sizes = [8, 96], strides = [1, 1]} : vector<64x96xf32> to vector<8x96xf32>
    %132 = arith.truncf %130 : vector<8x32xf32> to vector<8x32xbf16>
    %cst_24 = arith.constant dense<0.000000e+00> : vector<8x96xf32>
    %133 = tpu.matmul %132, %1, %cst_24 {dimension_numbers = #tpu.dot_dimension_numbers<[1], [0], [0], [1], [0, 0, 1, 1], [], []>} : vector<8x32xbf16>, vector<32x96xbf16>, vector<8x96xf32> -> vector<8x96xf32>
    %134 = arith.addf %133, %5 : vector<8x96xf32>
    %135 = vector.extract_strided_slice %131 {offsets = [0, 0], sizes = [8, 64], strides = [1, 1]} : vector<8x96xf32> to vector<8x64xf32>
    %136 = vector.extract_strided_slice %134 {offsets = [0, 0], sizes = [8, 64], strides = [1, 1]} : vector<8x96xf32> to vector<8x64xf32>
    %137 = arith.addf %135, %136 : vector<8x64xf32>
    %138 = arith.negf %137 : vector<8x64xf32>
    %139 = math.exp %138 : vector<8x64xf32>
    %cst_25 = arith.constant 1.000000e+00 : f32
    %140 = vector.broadcast %cst_25 : f32 to vector<8x64xf32>
    %141 = arith.addf %140, %139 : vector<8x64xf32>
    %142 = arith.divf %140, %141 : vector<8x64xf32>
    %143 = vector.extract_strided_slice %142 {offsets = [0, 0], sizes = [8, 32], strides = [1, 1]} : vector<8x64xf32> to vector<8x32xf32>
    %144 = vector.extract_strided_slice %142 {offsets = [0, 32], sizes = [8, 32], strides = [1, 1]} : vector<8x64xf32> to vector<8x32xf32>
    %145 = vector.extract_strided_slice %131 {offsets = [0, 64], sizes = [8, 32], strides = [1, 1]} : vector<8x96xf32> to vector<8x32xf32>
    %146 = vector.extract_strided_slice %134 {offsets = [0, 64], sizes = [8, 32], strides = [1, 1]} : vector<8x96xf32> to vector<8x32xf32>
    %147 = arith.mulf %143, %146 : vector<8x32xf32>
    %148 = arith.addf %145, %147 : vector<8x32xf32>
    %149 = math.tanh %148 : vector<8x32xf32>
    %cst_26 = arith.constant 1.000000e+00 : f32
    %150 = vector.broadcast %cst_26 : f32 to vector<8x32xf32>
    %151 = arith.subf %150, %144 : vector<8x32xf32>
    %152 = arith.mulf %151, %149 : vector<8x32xf32>
    %153 = arith.mulf %144, %130 : vector<8x32xf32>
    %154 = arith.addf %152, %153 : vector<8x32xf32>
    %155 = vector.extract_strided_slice %9 {offsets = [48, 0], sizes = [8, 96], strides = [1, 1]} : vector<64x96xf32> to vector<8x96xf32>
    %156 = arith.truncf %154 : vector<8x32xf32> to vector<8x32xbf16>
    %cst_27 = arith.constant dense<0.000000e+00> : vector<8x96xf32>
    %157 = tpu.matmul %156, %1, %cst_27 {dimension_numbers = #tpu.dot_dimension_numbers<[1], [0], [0], [1], [0, 0, 1, 1], [], []>} : vector<8x32xbf16>, vector<32x96xbf16>, vector<8x96xf32> -> vector<8x96xf32>
    %158 = arith.addf %157, %5 : vector<8x96xf32>
    %159 = vector.extract_strided_slice %155 {offsets = [0, 0], sizes = [8, 64], strides = [1, 1]} : vector<8x96xf32> to vector<8x64xf32>
    %160 = vector.extract_strided_slice %158 {offsets = [0, 0], sizes = [8, 64], strides = [1, 1]} : vector<8x96xf32> to vector<8x64xf32>
    %161 = arith.addf %159, %160 : vector<8x64xf32>
    %162 = arith.negf %161 : vector<8x64xf32>
    %163 = math.exp %162 : vector<8x64xf32>
    %cst_28 = arith.constant 1.000000e+00 : f32
    %164 = vector.broadcast %cst_28 : f32 to vector<8x64xf32>
    %165 = arith.addf %164, %163 : vector<8x64xf32>
    %166 = arith.divf %164, %165 : vector<8x64xf32>
    %167 = vector.extract_strided_slice %166 {offsets = [0, 0], sizes = [8, 32], strides = [1, 1]} : vector<8x64xf32> to vector<8x32xf32>
    %168 = vector.extract_strided_slice %166 {offsets = [0, 32], sizes = [8, 32], strides = [1, 1]} : vector<8x64xf32> to vector<8x32xf32>
    %169 = vector.extract_strided_slice %155 {offsets = [0, 64], sizes = [8, 32], strides = [1, 1]} : vector<8x96xf32> to vector<8x32xf32>
    %170 = vector.extract_strided_slice %158 {offsets = [0, 64], sizes = [8, 32], strides = [1, 1]} : vector<8x96xf32> to vector<8x32xf32>
    %171 = arith.mulf %167, %170 : vector<8x32xf32>
    %172 = arith.addf %169, %171 : vector<8x32xf32>
    %173 = math.tanh %172 : vector<8x32xf32>
    %cst_29 = arith.constant 1.000000e+00 : f32
    %174 = vector.broadcast %cst_29 : f32 to vector<8x32xf32>
    %175 = arith.subf %174, %168 : vector<8x32xf32>
    %176 = arith.mulf %175, %173 : vector<8x32xf32>
    %177 = arith.mulf %168, %154 : vector<8x32xf32>
    %178 = arith.addf %176, %177 : vector<8x32xf32>
    %179 = vector.extract_strided_slice %9 {offsets = [56, 0], sizes = [8, 96], strides = [1, 1]} : vector<64x96xf32> to vector<8x96xf32>
    %180 = arith.truncf %178 : vector<8x32xf32> to vector<8x32xbf16>
    %cst_30 = arith.constant dense<0.000000e+00> : vector<8x96xf32>
    %181 = tpu.matmul %180, %1, %cst_30 {dimension_numbers = #tpu.dot_dimension_numbers<[1], [0], [0], [1], [0, 0, 1, 1], [], []>} : vector<8x32xbf16>, vector<32x96xbf16>, vector<8x96xf32> -> vector<8x96xf32>
    %182 = arith.addf %181, %5 : vector<8x96xf32>
    %183 = vector.extract_strided_slice %179 {offsets = [0, 0], sizes = [8, 64], strides = [1, 1]} : vector<8x96xf32> to vector<8x64xf32>
    %184 = vector.extract_strided_slice %182 {offsets = [0, 0], sizes = [8, 64], strides = [1, 1]} : vector<8x96xf32> to vector<8x64xf32>
    %185 = arith.addf %183, %184 : vector<8x64xf32>
    %186 = arith.negf %185 : vector<8x64xf32>
    %187 = math.exp %186 : vector<8x64xf32>
    %cst_31 = arith.constant 1.000000e+00 : f32
    %188 = vector.broadcast %cst_31 : f32 to vector<8x64xf32>
    %189 = arith.addf %188, %187 : vector<8x64xf32>
    %190 = arith.divf %188, %189 : vector<8x64xf32>
    %191 = vector.extract_strided_slice %190 {offsets = [0, 0], sizes = [8, 32], strides = [1, 1]} : vector<8x64xf32> to vector<8x32xf32>
    %192 = vector.extract_strided_slice %190 {offsets = [0, 32], sizes = [8, 32], strides = [1, 1]} : vector<8x64xf32> to vector<8x32xf32>
    %193 = vector.extract_strided_slice %179 {offsets = [0, 64], sizes = [8, 32], strides = [1, 1]} : vector<8x96xf32> to vector<8x32xf32>
    %194 = vector.extract_strided_slice %182 {offsets = [0, 64], sizes = [8, 32], strides = [1, 1]} : vector<8x96xf32> to vector<8x32xf32>
    %195 = arith.mulf %191, %194 : vector<8x32xf32>
    %196 = arith.addf %193, %195 : vector<8x32xf32>
    %197 = math.tanh %196 : vector<8x32xf32>
    %cst_32 = arith.constant 1.000000e+00 : f32
    %198 = vector.broadcast %cst_32 : f32 to vector<8x32xf32>
    %199 = arith.subf %198, %192 : vector<8x32xf32>
    %200 = arith.mulf %199, %197 : vector<8x32xf32>
    %201 = arith.mulf %192, %178 : vector<8x32xf32>
    %202 = arith.addf %200, %201 : vector<8x32xf32>
    %c0_33 = arith.constant 0 : index
    %c0_34 = arith.constant 0 : index
    %203 = vector.load %arg4[%c0_33, %c0_34] : memref<8x32xf32, #tpu.memory_space<vmem>>, vector<8x32xf32>
    tpu.vector_store %arg4[%c0_33, %c0_34], %202 {strides = array<i32>} : memref<8x32xf32, #tpu.memory_space<vmem>>, vector<8x32xf32>,
    return
  }
}

</mosaic_0001>

<bundles_post_ra>
// kernel: player_temporal_encoder.1
= control target key start
LH: loop header
LB: loop body
LE: loop exit
PB: predicated region body
PF: predicated region fallthrough
CT: control target
= control target key end

     0   :  { %vm69_vm0 = vcmask 1041408   ;;  %vm70_vm1 = vcmask 1042432   ;;  %v737_v2 = vmov 65535   ;;  %s881_s0 = inlined_call_operand.vmem [shape: bf16[64,5], index: 0, kind: input, shape index: {}]   ;;  %s882_s1 = inlined_call_operand.vmem [shape: bf16[5,96], index: 1, kind: input, shape index: {}]   ;;  %s883_s2 = inlined_call_operand.vmem [shape: bf16[32,96], index: 2, kind: input, shape index: {}]   ;;  %s884_s3 = inlined_call_operand.vmem [shape: f32[2,96], index: 3, kind: input, shape index: {}]   ;;  %s885_s4 = inlined_call_operand.hbm [shape: f32[8,32], index: 4, kind: output, shape index: {}]  }
   0x1   :  { %v770_v0 = vld [vmem:[%s883_s2 + $0x8] sm:$0xff]  ;;  %v19_v1 = vld [vmem:[%s882_s1] sm:$0x7]  ;;  %v71_v3 = vsel %vm69_vm0, 4294967295, %v737_v2 }
   0x2   :  { %127 = vmatpush.bf16.msra.mxu1 %v770_v0  ;;  %v72_v4 = vsel %vm70_vm1, %v71_v3, 0  ;;  %v779_v5 = vld [vmem:[%s883_s2] sm:$0xff]  ;;  %186 = vmatpush.bf16.msra.mxu2 %v770_v0 }
   0x3   :  { %v74_v6 = vand.u32 %v72_v4, %v19_v1  ;;  %245 = vmatpush.bf16.msra.mxu3 %v770_v0 }
   0x4   :  { %9 = vsyncpa [#allocation3], 0  ;;  %v652_v7 = vld [vmem:[%s881_s0] sm:$0xff]  ;;  %vm56_vm2 = vcmask 39936   ;;  %v738_v8 = vmov 0   ;;  %s739_s23 = smov 64  }
   0x5   :  { %83 = vmatpush.bf16.msra.mxu0 %v74_v6  ;;  %v801_v9 = vld [vmem:[%s884_s3 + $0x1] ss:$0 sm:$0xff]  ;;  %v808_v13 = vld [vmem:[%s884_s3] ss:$0 sm:$0xff]  ;;  %s740_s3 = smov 96   ;;  %vm117_vm7 = vcmask 261120  }
   0x6   :  { %128 = vmatpush.bf16.msra.mxu1 %v779_v5  ;;  %187 = vmatpush.bf16.msra.mxu2 %v779_v5  ;;  %s598_s9 = sshll.u32 %s885_s4, 4  ;;  %s599_s9 = int_to_ptr.hbm [resolvable:$true] %s598_s9 }
   0x7   :  { %246 = vmatpush.bf16.msra.mxu3 %v779_v5 }
   0x8   :  { %623 = vmatmul.msk.bf16.vlgmr.msra.gmra.mxu0 %vm56_vm2, %v652_v7 }
   0x9   :  { %129 = vmatmul.bf16.vlgmr.msra.gmra.mxu1 %v738_v8  ;;  %v653_v8 = vld [vmem:[%s881_s0 + $0x8] sm:$0xff] }
   0xa   :  { %304 = vmatpush.bf16.msrb.mxu1 %v770_v0  ;;  %363 = vmatpush.bf16.msrb.mxu2 %v770_v0 }
   0xb   :  { %422 = vmatpush.bf16.msrb.mxu3 %v770_v0 }
   0xe   :  { %305 = vmatpush.bf16.msrb.mxu1 %v779_v5  ;;  %364 = vmatpush.bf16.msrb.mxu2 %v779_v5 }
   0xf   :  { %423 = vmatpush.bf16.msrb.mxu3 %v779_v5 }
  0x12   :  { %481 = vmatpush.bf16.msra.mxu1 %v770_v0 }
  0x16   :  { %482 = vmatpush.bf16.msra.mxu1 %v779_v5 }
  0x18   :  { %624 = vmatmul.msk.bf16.gmra.mxu0 %vm56_vm2, %v653_v8 }
  0x85   :  { %v85_v14 = vpop.f32.mrf.mxu0 }
  0x86   :  { %v130_v10 = vpop.f32.mrf.mxu1  ;;  %v86_v15 = vadd.f32 %v808_v13, %v85_v14 }
  0x87   :  { %v131_v11 = vadd.f32 %v801_v9, %v130_v10 }
  0x89   :  { %155 = vrot.lane.b32.xlu0 %v131_v11, %s739_s23  ;;  %v134_v16 = vadd.f32 %v131_v11, %v86_v15 }
  0x8b   :  { %v635_v17 = vmul.f32 -1.442695, %v134_v16 }
  0x8d   :  { %663 = vpow2.f32 %v635_v17  ;;  %v87_v45 = vpop.f32.mrf.mxu0 }
  0x8e   :  { %v132_v12 = vpop.f32.mrf.mxu1  ;;  %v88_v46 = vadd.f32 %v808_v13, %v87_v45 }
  0x93   :  { %v664_v18 = vpop.eup %663 }
  0x94   :  { %v138_v19 = vadd.f32 1.0, %v664_v18 }
  0x96   :  { %665 = vrcp.f32 %v138_v19  ;;  %v150_v25 = vand.u32 2147483648, %v138_v19  ;;  %vm144_vm4 = vweird.f32 %v138_v19  ;;  %v148_v26 = vand.u32 2147483647, %v138_v19 }
  0x98   :  { %v151_v28 = vor.u32 1.1754944e-38, %v150_v25  ;;  %vm149_vm6 = vcmp.eq.f32.partialorder %v148_v26, 8.507059e+37 }
  0x9c   :  { %v666_v20 = vpop.eup %665 }
  0x9d   :  { %v140_v21 = vmul.f32 %v666_v20, %v138_v19  ;;  %vm145_vm3 = vweird.f32 %v666_v20 }
  0x9e   :  { %vm146_vm5 = vmor %vm144_vm4, %vm145_vm3 }
  0x9f   :  { %v141_v22 = vsub.f32 1.0, %v140_v21 }
  0xa1   :  { %v142_v23 = vmul.f32 %v666_v20, %v141_v22 }
  0xa3   :  { %v143_v24 = vadd.f32 %v666_v20, %v142_v23 }
  0xa5   :  { %v147_v27 = vsel %vm146_vm5, %v666_v20, %v143_v24 }
  0xa6   :  { %v152_v30 = vsel %vm149_vm6, %v151_v28, %v147_v27 }
  0xa7   :  { %v165_v35 = vsub.f32 1.0, %v152_v30  ;;  %v171_v37 = vmul.f32 0.0, %v152_v30 }
  0xfb   :  { %v156_v29 = vpop.permute.xlu0 %155 }
  0xfc   :  { %v158_v31 = vmul.f32 %v156_v29, %v152_v30 }
  0xfe   :  { %160 = vrot.lane.b32.xlu0 %v158_v31, %s739_s23 }
 0x170   :  { %v161_v32 = vpop.permute.xlu0 %160 }
 0x171   :  { %v163_v33 = vadd.f32 %v161_v32, %v86_v15  ;;  %v90_v15 = vpop.f32.mrf.mxu0 }
 0x172   :  { %v91_v16 = vadd.f32 %v808_v13, %v90_v15 }
 0x173   :  { %667 = vtanh.f32 %v163_v33 }
 0x179   :  { %v668_v34 = vpop.eup %667 }
 0x17a   :  { %167 = vrot.lane.b32.xlu1 %v668_v34, %s740_s3 }
 0x1ec   :  { %v168_v36 = vpop.permute.xlu1 %167 }
 0x1ed   :  { %v170_v38 = vmul.f32 %v168_v36, %v165_v35 }
 0x1ef   :  { %v172_v39 = vadd.f32 %v171_v37, %v170_v38 }
 0x1f1   :  { %v173_v40 = vpack.c.bf16 %v172_v39, %v172_v39 }
 0x1f3   :  { %175 = vrot.lane.b32.xlu1 %v173_v40, %s740_s3 }
 0x265   :  { %v176_v41 = vpop.permute.xlu1 %175 }
 0x266   :  { %636 = vmatmul.msk.bf16.vlgmr.msra.gmra.mxu2 %vm117_vm7, %v176_v41 }
 0x267   :  { %540 = vmatpush.bf16.msra.mxu2 %v770_v0 }
 0x26b   :  { %541 = vmatpush.bf16.msra.mxu2 %v779_v5 }
 0x2e9   :  { %v189_v42 = vpop.f32.mrf.mxu2 }
 0x2ea   :  { %v190_v43 = vadd.f32 %v801_v9, %v189_v42 }
 0x2ec   :  { %214 = vrot.lane.b32.xlu2 %v190_v43, %s739_s23  ;;  %v193_v47 = vadd.f32 %v190_v43, %v88_v46 }
 0x2ee   :  { %v637_v48 = vmul.f32 -1.442695, %v193_v47 }
 0x2f0   :  { %669 = vpow2.f32 %v637_v48 }
 0x2f1   :  { %v191_v44 = vpop.f32.mrf.mxu2 }
 0x2f6   :  { %v670_v49 = vpop.eup %669 }
 0x2f7   :  { %v197_v50 = vadd.f32 1.0, %v670_v49 }
 0x2f9   :  { %671 = vrcp.f32 %v197_v50  ;;  %v209_v56 = vand.u32 2147483648, %v197_v50  ;;  %vm203_vm9 = vweird.f32 %v197_v50  ;;  %v207_v57 = vand.u32 2147483647, %v197_v50 }
 0x2fb   :  { %v210_v59 = vor.u32 1.1754944e-38, %v209_v56  ;;  %vm208_vm11 = vcmp.eq.f32.partialorder %v207_v57, 8.507059e+37 }
 0x2ff   :  { %v672_v51 = vpop.eup %671 }
 0x300   :  { %v199_v52 = vmul.f32 %v672_v51, %v197_v50  ;;  %vm204_vm8 = vweird.f32 %v672_v51 }
 0x301   :  { %vm205_vm10 = vmor %vm203_vm9, %vm204_vm8 }
 0x302   :  { %v200_v53 = vsub.f32 1.0, %v199_v52 }
 0x304   :  { %v201_v54 = vmul.f32 %v672_v51, %v200_v53 }
 0x306   :  { %v202_v55 = vadd.f32 %v672_v51, %v201_v54 }
 0x308   :  { %v206_v58 = vsel %vm205_vm10, %v672_v51, %v202_v55 }
 0x309   :  { %v211_v61 = vsel %vm208_vm11, %v210_v59, %v206_v58 }
 0x30a   :  { %v224_v2 = vsub.f32 1.0, %v211_v61  ;;  %v230_v4 = vmul.f32 %v211_v61, %v172_v39 }
 0x346   :  { %v215_v60 = vpop.permute.xlu2 %214 }
 0x347   :  { %v217_v62 = vmul.f32 %v215_v60, %v211_v61 }
 0x349   :  { %219 = vrot.lane.b32.xlu2 %v217_v62, %s739_s23 }
 0x3a3   :  { %v220_v63 = vpop.permute.xlu2 %219 }
 0x3a4   :  { %v222_v0 = vadd.f32 %v220_v63, %v88_v46  ;;  %v92_v46 = vpop.f32.mrf.mxu0 }
 0x3a5   :  { %v93_v47 = vadd.f32 %v808_v13, %v92_v46 }
 0x3a6   :  { %673 = vtanh.f32 %v222_v0 }
 0x3ac   :  { %v674_v1 = vpop.eup %673 }
 0x3ad   :  { %226 = vrot.lane.b32.xlu0 %v674_v1, %s740_s3 }
 0x41f   :  { %v227_v3 = vpop.permute.xlu0 %226 }
 0x420   :  { %v229_v5 = vmul.f32 %v227_v3, %v224_v2 }
 0x422   :  { %v231_v6 = vadd.f32 %v230_v4, %v229_v5 }
 0x424   :  { %v232_v7 = vpack.c.bf16 %v231_v6, %v231_v6 }
 0x426   :  { %234 = vrot.lane.b32.xlu1 %v232_v7, %s740_s3 }
 0x498   :  { %v235_v10 = vpop.permute.xlu1 %234 }
 0x499   :  { %638 = vmatmul.msk.bf16.vlgmr.msra.gmra.mxu3 %vm117_vm7, %v235_v10  ;;  %v654_v10 = vld [vmem:[%s881_s0 + $0x10] sm:$0xff] }
 0x49a   :  { %625 = vmatmul.msk.bf16.gmra.mxu0 %vm56_vm2, %v654_v10 }
 0x51c   :  { %v248_v11 = vpop.f32.mrf.mxu3 }
 0x51d   :  { %v249_v12 = vadd.f32 %v801_v9, %v248_v11 }
 0x51f   :  { %273 = vrot.lane.b32.xlu2 %v249_v12, %s739_s23  ;;  %v252_v17 = vadd.f32 %v249_v12, %v91_v16 }
 0x521   :  { %v639_v18 = vmul.f32 -1.442695, %v252_v17 }
 0x523   :  { %675 = vpow2.f32 %v639_v18 }
 0x524   :  { %v250_v14 = vpop.f32.mrf.mxu3 }
 0x529   :  { %v676_v19 = vpop.eup %675 }
 0x52a   :  { %v256_v20 = vadd.f32 1.0, %v676_v19 }
 0x52c   :  { %677 = vrcp.f32 %v256_v20  ;;  %v268_v26 = vand.u32 2147483648, %v256_v20  ;;  %vm262_vm13 = vweird.f32 %v256_v20  ;;  %v266_v27 = vand.u32 2147483647, %v256_v20 }
 0x52e   :  { %v269_v29 = vor.u32 1.1754944e-38, %v268_v26  ;;  %vm267_vm15 = vcmp.eq.f32.partialorder %v266_v27, 8.507059e+37 }
 0x532   :  { %v678_v21 = vpop.eup %677 }
 0x533   :  { %v258_v22 = vmul.f32 %v678_v21, %v256_v20  ;;  %vm263_vm12 = vweird.f32 %v678_v21 }
 0x534   :  { %vm264_vm14 = vmor %vm262_vm13, %vm263_vm12 }
 0x535   :  { %v259_v23 = vsub.f32 1.0, %v258_v22 }
 0x537   :  { %v260_v24 = vmul.f32 %v678_v21, %v259_v23 }
 0x539   :  { %v261_v25 = vadd.f32 %v678_v21, %v260_v24 }
 0x53b   :  { %v265_v28 = vsel %vm264_vm14, %v678_v21, %v261_v25 }
 0x53c   :  { %v270_v31 = vsel %vm267_vm15, %v269_v29, %v265_v28 }
 0x53d   :  { %v283_v36 = vsub.f32 1.0, %v270_v31  ;;  %v289_v38 = vmul.f32 %v270_v31, %v231_v6 }
 0x579   :  { %v274_v30 = vpop.permute.xlu2 %273 }
 0x57a   :  { %v276_v32 = vmul.f32 %v274_v30, %v270_v31 }
 0x57c   :  { %278 = vrot.lane.b32.xlu0 %v276_v32, %s739_s23 }
 0x5ee   :  { %v279_v33 = vpop.permute.xlu0 %278 }
 0x5ef   :  { %v281_v34 = vadd.f32 %v279_v33, %v91_v16  ;;  %v95_v16 = vpop.f32.mrf.mxu0 }
 0x5f0   :  { %v96_v17 = vadd.f32 %v808_v13, %v95_v16 }
 0x5f1   :  { %679 = vtanh.f32 %v281_v34 }
 0x5f7   :  { %v680_v35 = vpop.eup %679 }
 0x5f8   :  { %285 = vrot.lane.b32.xlu1 %v680_v35, %s740_s3 }
 0x66a   :  { %v286_v37 = vpop.permute.xlu1 %285 }
 0x66b   :  { %v288_v39 = vmul.f32 %v286_v37, %v283_v36 }
 0x66d   :  { %v290_v40 = vadd.f32 %v289_v38, %v288_v39 }
 0x66f   :  { %v291_v41 = vpack.c.bf16 %v290_v40, %v290_v40 }
 0x671   :  { %293 = vrot.lane.b32.xlu2 %v291_v41, %s740_s3 }
 0x6cb   :  { %v294_v42 = vpop.permute.xlu2 %293 }
 0x6cc   :  { %640 = vmatmul.msk.bf16.vlgmr.msrb.gmra.mxu1 %vm117_vm7, %v294_v42 }
 0x749   :  { %v307_v43 = vpop.f32.mrf.mxu1 }
 0x74a   :  { %v308_v44 = vadd.f32 %v801_v9, %v307_v43 }
 0x74c   :  { %332 = vrot.lane.b32.xlu0 %v308_v44, %s739_s23  ;;  %v311_v48 = vadd.f32 %v308_v44, %v93_v47 }
 0x74e   :  { %v641_v49 = vmul.f32 -1.442695, %v311_v48 }
 0x750   :  { %681 = vpow2.f32 %v641_v49 }
 0x751   :  { %v309_v45 = vpop.f32.mrf.mxu1 }
 0x756   :  { %v682_v50 = vpop.eup %681 }
 0x757   :  { %v315_v51 = vadd.f32 1.0, %v682_v50 }
 0x759   :  { %683 = vrcp.f32 %v315_v51  ;;  %v327_v57 = vand.u32 2147483648, %v315_v51  ;;  %vm321_vm1 = vweird.f32 %v315_v51  ;;  %v325_v58 = vand.u32 2147483647, %v315_v51 }
 0x75b   :  { %v328_v60 = vor.u32 1.1754944e-38, %v327_v57  ;;  %vm326_vm4 = vcmp.eq.f32.partialorder %v325_v58, 8.507059e+37 }
 0x75f   :  { %v684_v52 = vpop.eup %683 }
 0x760   :  { %v317_v53 = vmul.f32 %v684_v52, %v315_v51  ;;  %vm322_vm0 = vweird.f32 %v684_v52 }
 0x761   :  { %vm323_vm3 = vmor %vm321_vm1, %vm322_vm0 }
 0x762   :  { %v318_v54 = vsub.f32 1.0, %v317_v53 }
 0x764   :  { %v319_v55 = vmul.f32 %v684_v52, %v318_v54 }
 0x766   :  { %v320_v56 = vadd.f32 %v684_v52, %v319_v55 }
 0x768   :  { %v324_v59 = vsel %vm323_vm3, %v684_v52, %v320_v56 }
 0x769   :  { %v329_v62 = vsel %vm326_vm4, %v328_v60, %v324_v59 }
 0x76a   :  { %v342_v3 = vsub.f32 1.0, %v329_v62  ;;  %v348_v5 = vmul.f32 %v329_v62, %v290_v40 }
 0x7be   :  { %v333_v61 = vpop.permute.xlu0 %332 }
 0x7bf   :  { %v335_v63 = vmul.f32 %v333_v61, %v329_v62 }
 0x7c1   :  { %337 = vrot.lane.b32.xlu1 %v335_v63, %s739_s23 }
 0x833   :  { %v338_v0 = vpop.permute.xlu1 %337 }
 0x834   :  { %v340_v1 = vadd.f32 %v338_v0, %v93_v47  ;;  %v97_v47 = vpop.f32.mrf.mxu0 }
 0x835   :  { %v98_v48 = vadd.f32 %v808_v13, %v97_v47 }
 0x836   :  { %685 = vtanh.f32 %v340_v1 }
 0x83c   :  { %v686_v2 = vpop.eup %685 }
 0x83d   :  { %344 = vrot.lane.b32.xlu2 %v686_v2, %s740_s3 }
 0x897   :  { %v345_v4 = vpop.permute.xlu2 %344 }
 0x898   :  { %v347_v6 = vmul.f32 %v345_v4, %v342_v3 }
 0x89a   :  { %v349_v7 = vadd.f32 %v348_v5, %v347_v6 }
 0x89c   :  { %v350_v8 = vpack.c.bf16 %v349_v7, %v349_v7 }
 0x89e   :  { %352 = vrot.lane.b32.xlu0 %v350_v8, %s740_s3 }
 0x910   :  { %v353_v11 = vpop.permute.xlu0 %352 }
 0x911   :  { %642 = vmatmul.msk.bf16.vlgmr.msrb.gmra.mxu2 %vm117_vm7, %v353_v11  ;;  %v655_v11 = vld [vmem:[%s881_s0 + $0x18] sm:$0xff]  ;;  %s741_s0 = smov [#allocation2]  }
 0x912   :  { %626 = vmatmul.msk.bf16.gmra.mxu0 %vm56_vm2, %v655_v11  ;;  %s596_s6 = sshll.u32 %s741_s0, 4  ;;  %s597_s6 = int_to_ptr.vmem [resolvable:$true] %s596_s6 }
 0x994   :  { %v366_v12 = vpop.f32.mrf.mxu2 }
 0x995   :  { %v367_v14 = vadd.f32 %v801_v9, %v366_v12 }
 0x997   :  { %391 = vrot.lane.b32.xlu1 %v367_v14, %s739_s23  ;;  %v370_v18 = vadd.f32 %v367_v14, %v96_v17 }
 0x999   :  { %v643_v19 = vmul.f32 -1.442695, %v370_v18 }
 0x99b   :  { %687 = vpow2.f32 %v643_v19 }
 0x99c   :  { %v368_v15 = vpop.f32.mrf.mxu2 }
 0x9a1   :  { %v688_v20 = vpop.eup %687 }
 0x9a2   :  { %v374_v21 = vadd.f32 1.0, %v688_v20 }
 0x9a4   :  { %689 = vrcp.f32 %v374_v21  ;;  %v386_v27 = vand.u32 2147483648, %v374_v21  ;;  %vm380_vm6 = vweird.f32 %v374_v21  ;;  %v384_v28 = vand.u32 2147483647, %v374_v21 }
 0x9a6   :  { %v387_v30 = vor.u32 1.1754944e-38, %v386_v27  ;;  %vm385_vm9 = vcmp.eq.f32.partialorder %v384_v28, 8.507059e+37 }
 0x9aa   :  { %v690_v22 = vpop.eup %689 }
 0x9ab   :  { %v376_v23 = vmul.f32 %v690_v22, %v374_v21  ;;  %vm381_vm5 = vweird.f32 %v690_v22 }
 0x9ac   :  { %vm382_vm8 = vmor %vm380_vm6, %vm381_vm5 }
 0x9ad   :  { %v377_v24 = vsub.f32 1.0, %v376_v23 }
 0x9af   :  { %v378_v25 = vmul.f32 %v690_v22, %v377_v24 }
 0x9b1   :  { %v379_v26 = vadd.f32 %v690_v22, %v378_v25 }
 0x9b3   :  { %v383_v29 = vsel %vm382_vm8, %v690_v22, %v379_v26 }
 0x9b4   :  { %v388_v32 = vsel %vm385_vm9, %v387_v30, %v383_v29 }
 0x9b5   :  { %v401_v37 = vsub.f32 1.0, %v388_v32  ;;  %v407_v39 = vmul.f32 %v388_v32, %v349_v7 }
 0xa09   :  { %v392_v31 = vpop.permute.xlu1 %391 }
 0xa0a   :  { %v394_v33 = vmul.f32 %v392_v31, %v388_v32 }
 0xa0c   :  { %396 = vrot.lane.b32.xlu2 %v394_v33, %s739_s23 }
 0xa66   :  { %v397_v34 = vpop.permute.xlu2 %396 }
 0xa67   :  { %v399_v35 = vadd.f32 %v397_v34, %v96_v17  ;;  %v100_v17 = vpop.f32.mrf.mxu0 }
 0xa68   :  { %v101_v18 = vadd.f32 %v808_v13, %v100_v17 }
 0xa69   :  { %691 = vtanh.f32 %v399_v35 }
 0xa6f   :  { %v692_v36 = vpop.eup %691 }
 0xa70   :  { %403 = vrot.lane.b32.xlu0 %v692_v36, %s740_s3 }
 0xae2   :  { %v404_v38 = vpop.permute.xlu0 %403 }
 0xae3   :  { %v406_v40 = vmul.f32 %v404_v38, %v401_v37 }
 0xae5   :  { %v408_v41 = vadd.f32 %v407_v39, %v406_v40 }
 0xae7   :  { %v409_v42 = vpack.c.bf16 %v408_v41, %v408_v41 }
 0xae9   :  { %411 = vrot.lane.b32.xlu1 %v409_v42, %s740_s3 }
 0xb5b   :  { %v412_v43 = vpop.permute.xlu1 %411 }
 0xb5c   :  { %644 = vmatmul.msk.bf16.vlgmr.msrb.gmra.mxu3 %vm117_vm7, %v412_v43 }
 0xbdf   :  { %v425_v44 = vpop.f32.mrf.mxu3 }
 0xbe0   :  { %v426_v45 = vadd.f32 %v801_v9, %v425_v44 }
 0xbe2   :  { %450 = vrot.lane.b32.xlu2 %v426_v45, %s739_s23  ;;  %v429_v49 = vadd.f32 %v426_v45, %v98_v48 }
 0xbe4   :  { %v645_v50 = vmul.f32 -1.442695, %v429_v49 }
 0xbe6   :  { %693 = vpow2.f32 %v645_v50 }
 0xbe7   :  { %v427_v46 = vpop.f32.mrf.mxu3 }
 0xbec   :  { %v694_v51 = vpop.eup %693 }
 0xbed   :  { %v433_v52 = vadd.f32 1.0, %v694_v51 }
 0xbef   :  { %695 = vrcp.f32 %v433_v52  ;;  %v445_v58 = vand.u32 2147483648, %v433_v52  ;;  %vm439_vm11 = vweird.f32 %v433_v52  ;;  %v443_v59 = vand.u32 2147483647, %v433_v52 }
 0xbf1   :  { %v446_v61 = vor.u32 1.1754944e-38, %v445_v58  ;;  %vm444_vm13 = vcmp.eq.f32.partialorder %v443_v59, 8.507059e+37 }
 0xbf5   :  { %v696_v53 = vpop.eup %695 }
 0xbf6   :  { %v435_v54 = vmul.f32 %v696_v53, %v433_v52  ;;  %vm440_vm10 = vweird.f32 %v696_v53 }
 0xbf7   :  { %vm441_vm12 = vmor %vm439_vm11, %vm440_vm10 }
 0xbf8   :  { %v436_v55 = vsub.f32 1.0, %v435_v54 }
 0xbfa   :  { %v437_v56 = vmul.f32 %v696_v53, %v436_v55 }
 0xbfc   :  { %v438_v57 = vadd.f32 %v696_v53, %v437_v56 }
 0xbfe   :  { %v442_v60 = vsel %vm441_vm12, %v696_v53, %v438_v57 }
 0xbff   :  { %v447_v63 = vsel %vm444_vm13, %v446_v61, %v442_v60 }
 0xc00   :  { %v460_v4 = vsub.f32 1.0, %v447_v63  ;;  %v466_v6 = vmul.f32 %v447_v63, %v408_v41 }
 0xc3c   :  { %v451_v62 = vpop.permute.xlu2 %450 }
 0xc3d   :  { %v453_v0 = vmul.f32 %v451_v62, %v447_v63 }
 0xc3f   :  { %455 = vrot.lane.b32.xlu0 %v453_v0, %s739_s23 }
 0xcb1   :  { %v456_v1 = vpop.permute.xlu0 %455 }
 0xcb2   :  { %v458_v2 = vadd.f32 %v456_v1, %v98_v48  ;;  %v102_v48 = vpop.f32.mrf.mxu0 }
 0xcb3   :  { %v103_v49 = vadd.f32 %v808_v13, %v102_v48 }
 0xcb4   :  { %697 = vtanh.f32 %v458_v2 }
 0xcba   :  { %v698_v3 = vpop.eup %697 }
 0xcbb   :  { %462 = vrot.lane.b32.xlu1 %v698_v3, %s740_s3 }
 0xd2d   :  { %v463_v5 = vpop.permute.xlu1 %462 }
 0xd2e   :  { %v465_v7 = vmul.f32 %v463_v5, %v460_v4 }
 0xd30   :  { %v467_v8 = vadd.f32 %v466_v6, %v465_v7 }
 0xd32   :  { %v468_v10 = vpack.c.bf16 %v467_v8, %v467_v8 }
 0xd34   :  { %470 = vrot.lane.b32.xlu2 %v468_v10, %s740_s3 }
 0xd8e   :  { %v471_v12 = vpop.permute.xlu2 %470 }
 0xd8f   :  { %646 = vmatmul.msk.bf16.vlgmr.msra.gmra.mxu1 %vm117_vm7, %v471_v12 }
 0xe0c   :  { %v484_v14 = vpop.f32.mrf.mxu1 }
 0xe0d   :  { %v485_v15 = vadd.f32 %v801_v9, %v484_v14 }
 0xe0f   :  { %509 = vrot.lane.b32.xlu0 %v485_v15, %s739_s23  ;;  %v488_v19 = vadd.f32 %v485_v15, %v101_v18 }
 0xe11   :  { %v647_v20 = vmul.f32 -1.442695, %v488_v19 }
 0xe13   :  { %699 = vpow2.f32 %v647_v20 }
 0xe14   :  { %v486_v16 = vpop.f32.mrf.mxu1 }
 0xe19   :  { %v700_v21 = vpop.eup %699 }
 0xe1a   :  { %v492_v22 = vadd.f32 1.0, %v700_v21 }
 0xe1c   :  { %701 = vrcp.f32 %v492_v22  ;;  %v504_v28 = vand.u32 2147483648, %v492_v22  ;;  %vm498_vm14 = vweird.f32 %v492_v22  ;;  %v502_v29 = vand.u32 2147483647, %v492_v22 }
 0xe1e   :  { %v505_v31 = vor.u32 1.1754944e-38, %v504_v28  ;;  %vm503_vm0 = vcmp.eq.f32.partialorder %v502_v29, 8.507059e+37 }
 0xe22   :  { %v702_v23 = vpop.eup %701 }
 0xe23   :  { %v494_v24 = vmul.f32 %v702_v23, %v492_v22  ;;  %vm499_vm2 = vweird.f32 %v702_v23 }
 0xe24   :  { %vm500_vm15 = vmor %vm498_vm14, %vm499_vm2 }
 0xe25   :  { %v495_v25 = vsub.f32 1.0, %v494_v24 }
 0xe27   :  { %v496_v26 = vmul.f32 %v702_v23, %v495_v25 }
 0xe29   :  { %v497_v27 = vadd.f32 %v702_v23, %v496_v26 }
 0xe2b   :  { %v501_v30 = vsel %vm500_vm15, %v702_v23, %v497_v27 }
 0xe2c   :  { %v506_v33 = vsel %vm503_vm0, %v505_v31, %v501_v30 }
 0xe2d   :  { %v519_v38 = vsub.f32 1.0, %v506_v33  ;;  %v525_v40 = vmul.f32 %v506_v33, %v467_v8 }
 0xe81   :  { %v510_v32 = vpop.permute.xlu0 %509 }
 0xe82   :  { %v512_v34 = vmul.f32 %v510_v32, %v506_v33 }
 0xe84   :  { %514 = vrot.lane.b32.xlu1 %v512_v34, %s739_s23 }
 0xef6   :  { %v515_v35 = vpop.permute.xlu1 %514 }
 0xef7   :  { %v517_v36 = vadd.f32 %v515_v35, %v101_v18 }
 0xef9   :  { %703 = vtanh.f32 %v517_v36 }
 0xeff   :  { %v704_v37 = vpop.eup %703 }
 0xf00   :  { %521 = vrot.lane.b32.xlu2 %v704_v37, %s740_s3 }
 0xf5a   :  { %v522_v39 = vpop.permute.xlu2 %521 }
 0xf5b   :  { %v524_v41 = vmul.f32 %v522_v39, %v519_v38 }
 0xf5d   :  { %v526_v42 = vadd.f32 %v525_v40, %v524_v41 }
 0xf5f   :  { %v527_v43 = vpack.c.bf16 %v526_v42, %v526_v42 }
 0xf61   :  { %529 = vrot.lane.b32.xlu0 %v527_v43, %s740_s3 }
 0xfd3   :  { %v530_v44 = vpop.permute.xlu0 %529 }
 0xfd4   :  { %648 = vmatmul.msk.bf16.vlgmr.msra.gmra.mxu2 %vm117_vm7, %v530_v44 }
0x1057   :  { %v543_v45 = vpop.f32.mrf.mxu2 }
0x1058   :  { %v544_v46 = vadd.f32 %v801_v9, %v543_v45 }
0x105a   :  { %568 = vrot.lane.b32.xlu1 %v544_v46, %s739_s23  ;;  %v547_v50 = vadd.f32 %v544_v46, %v103_v49 }
0x105c   :  { %v649_v51 = vmul.f32 -1.442695, %v547_v50 }
0x105e   :  { %705 = vpow2.f32 %v649_v51 }
0x105f   :  { %v545_v47 = vpop.f32.mrf.mxu2 }
0x1064   :  { %v706_v52 = vpop.eup %705 }
0x1065   :  { %v551_v53 = vadd.f32 1.0, %v706_v52 }
0x1067   :  { %707 = vrcp.f32 %v551_v53  ;;  %v563_v59 = vand.u32 2147483648, %v551_v53  ;;  %vm557_vm3 = vweird.f32 %v551_v53  ;;  %v561_v9 = vand.u32 2147483647, %v551_v53 }
0x1069   :  { %v564_v61 = vor.u32 1.1754944e-38, %v563_v59  ;;  %vm562_vm5 = vcmp.eq.f32.partialorder %v561_v9, 8.507059e+37 }
0x106d   :  { %v708_v54 = vpop.eup %707 }
0x106e   :  { %v553_v55 = vmul.f32 %v708_v54, %v551_v53  ;;  %vm558_vm1 = vweird.f32 %v708_v54 }
0x106f   :  { %vm559_vm4 = vmor %vm557_vm3, %vm558_vm1 }
0x1070   :  { %v554_v56 = vsub.f32 1.0, %v553_v55 }
0x1072   :  { %v555_v57 = vmul.f32 %v708_v54, %v554_v56 }
0x1074   :  { %v556_v58 = vadd.f32 %v708_v54, %v555_v57 }
0x1076   :  { %v560_v60 = vsel %vm559_vm4, %v708_v54, %v556_v58 }
0x1077   :  { %v565_v62 = vsel %vm562_vm5, %v564_v61, %v560_v60 }
0x1078   :  { %v578_v3 = vsub.f32 1.0, %v565_v62  ;;  %v584_v5 = vmul.f32 %v565_v62, %v526_v42 }
0x10cc   :  { %v569_v13 = vpop.permute.xlu1 %568 }
0x10cd   :  { %v571_v63 = vmul.f32 %v569_v13, %v565_v62 }
0x10cf   :  { %573 = vrot.lane.b32.xlu2 %v571_v63, %s739_s23 }
0x1129   :  { %v574_v0 = vpop.permute.xlu2 %573 }
0x112a   :  { %v576_v1 = vadd.f32 %v574_v0, %v103_v49 }
0x112c   :  { %709 = vtanh.f32 %v576_v1 }
0x1132   :  { %v710_v2 = vpop.eup %709 }
0x1133   :  { %580 = vrot.lane.b32.xlu0 %v710_v2, %s740_s3 }
0x11a5   :  { %v581_v4 = vpop.permute.xlu0 %580 }
0x11a6   :  { %v583_v6 = vmul.f32 %v581_v4, %v578_v3 }
0x11a8   :  { %v585_v7 = vadd.f32 %v584_v5, %v583_v6 }
0x11aa   :  { %587 = vrot.lane.b32.xlu1 %v585_v7, %s740_s3 }
0x121c   :  { %v588_v8 = vpop.permute.xlu1 %587 }
0x121d   :  { %590 = vst.msk [vmem:[#allocation2] sm:$0xff] %vm117_vm7, %v588_v8 }
0x121e   :  { %601 = dma.vmem_to_hbm [thread:$0]  %s597_s6, 128, %s599_s9, [#allocation3]  }
0x121f   :  { %735 = dma.done.wait [#allocation3], 128  }
0x1220   :  { %736 = vsyncadd [#allocation3], 4294967168 }
0x1221   :  { %606 = vsyncpa [#allocation3], 1 }

</bundles_post_ra>
